<compile_context>
chip_gen: v5e
topology: v5e:2x2
jax: 0.10.0
libtpu: 0.0.40
codegen_flags: <defaults>
</compile_context>

<pallas_src>
import functools
import math

import numpy as np
import jax
import jax.numpy as jnp
from jax.experimental import pallas as pl
from jax.experimental.pallas import tpu as pltpu


# --------------------------------------------------------------------------
# host-side helpers (trace-time constants)
# --------------------------------------------------------------------------
_CONV_LANE_TARGET = 2048      # lanes per grid step, conv-only path
_INTERP_LANE_TARGET = 1024    # output lanes per grid step, interpolate path
_R_BYTES_BUDGET = 4 << 20     # VMEM budget for the (TL, s*TL) upsample matrix
_BATCH_TILE_CAP = 8           # batch rows folded into one grid step


def _round_up(x, m):
    return ((x + m - 1) // m) * m


def _pick_lane_tile(length, target):
    """Lane-tile size: full length if it fits, else a multiple of 128 close to
    `target` (preferring one that divides `length`; otherwise the last grid
    tile is ragged and relies on Pallas' masked edge blocks)."""
    target = max(128, (target // 128) * 128)
    if length <= target:
        return int(length)
    best = 0
    t = target
    while t >= 128:
        if length % t == 0:
            best = t
            break
        t -= 128
    if best * 2 >= target:
        return best
    return target


def _pick_batch_tile(n, cap=_BATCH_TILE_CAP):
    return max(1, min(int(n), int(cap)))


def _linear_interp_matrix(L, s):
    """Dense (L, L*s) f32 matrix G with (y @ G) == F.interpolate(y, scale_factor=s,
    mode='linear', align_corners=False).  Used only as the reference in __main__."""
    L_out = L * s
    j = np.arange(L_out, dtype=np.float64)
    src = np.maximum((j + 0.5) / float(s) - 0.5, 0.0)
    lo = np.minimum(np.floor(src).astype(np.int64), L - 1)
    hi = np.minimum(lo + 1, L - 1)
    lam = src - lo
    G = np.zeros((L, L_out), dtype=np.float64)
    np.add.at(G, (lo, np.arange(L_out)), 1.0 - lam)
    np.add.at(G, (hi, np.arange(L_out)), lam)
    return G.astype(np.float32)


def _banded_interp_tables(L, s, TLout):
    """Block-banded interpolation tables.

    Returns (starts[J], band, G[J, band, TLout]) such that for output tile j
    (output columns [j*TLout, (j+1)*TLout), the tail tile padded past L*s):
        out[:, tile j] == y[:, starts[j] : starts[j]+band] @ G[j]
    """
    L_out = L * s
    J = -(-L_out // TLout)                       # cdiv
    cols = np.arange(J * TLout, dtype=np.float64)
    src = np.maximum((cols + 0.5) / float(s) - 0.5, 0.0)
    lo = np.minimum(np.floor(src).astype(np.int64), L - 1)
    hi = np.minimum(lo + 1, L - 1)
    lam = src - lo
    lo = lo.reshape(J, TLout)
    hi = hi.reshape(J, TLout)
    w_lo = (1.0 - lam).reshape(J, TLout)
    w_hi = lam.reshape(J, TLout)

    width = int((hi.max(axis=1) - lo.min(axis=1) + 1).max())
    band = min(L, _round_up(width, 8))

    starts = np.zeros((J,), dtype=np.int64)
    G = np.zeros((J, band, TLout), dtype=np.float64)
    cidx = np.arange(TLout)
    for j in range(J):
        st = max(0, min(int(lo[j].min()), L - band))
        starts[j] = st
        np.add.at(G[j], (lo[j] - st, cidx), w_lo[j])
        np.add.at(G[j], (hi[j] - st, cidx), w_hi[j])
    return starts, band, G.astype(np.float32)


def _nearest_upsample_matrix(TL, s):
    """(TL, TL*s) 0/1 matrix R with (x @ R)[:, j] == x[:, j // s]."""
    R = np.zeros((TL, TL * s), dtype=np.float32)
    R[np.repeat(np.arange(TL), s), np.arange(TL * s)] = 1.0
    return R


def _phase_masks(TLo, s):
    """(s, TLo) 0/1 masks, masks[p, j] == 1 iff j % s == p."""
    M = np.zeros((s, TLo), dtype=np.float32)
    for p in range(s):
        M[p, p::s] = 1.0
    return M


@functools.lru_cache(maxsize=None)
def _vmem_limit_bytes():
    cap = 128 * 1024 * 1024
    try:
        cap = int(getattr(pltpu.get_tpu_info(), "vmem_capacity_bytes", cap))
    except Exception:
        pass
    # <= half of physical VMEM (v7x has only 64 MiB / TC), never above 64 MiB.
    return int(min(cap // 2, 64 * 1024 * 1024))


def _compiler_params():
    return pltpu.CompilerParams(
        dimension_semantics=("parallel", "parallel"),
        vmem_limit_bytes=_vmem_limit_bytes())


def _const_block_spec(block_shape, index_map):
    """BlockSpec for a grid-invariant operand; single-buffered when supported."""
    buffered = getattr(pl, "Buffered", None)
    if buffered is not None:
        try:
            return pl.BlockSpec(block_shape, index_map, pipeline_mode=buffered(1))
        except TypeError:
            pass
    return pl.BlockSpec(block_shape, index_map)


# --------------------------------------------------------------------------
# Pallas kernels
# --------------------------------------------------------------------------
def _conv1x1_kernel(x_ref, w_ref, b_ref, o_ref, *, tn):
    # x: (TN, Cin, TL)   w: (Cout, Cin)   b: (Cout, 1) f32   o: (TN, Cout, TL)
    w = w_ref[...]
    b = b_ref[...]
    for bi in range(tn):                          # static unroll over batch sub-tile
        y = jnp.dot(w, x_ref[bi], preferred_element_type=jnp.float32) + b
        o_ref[bi] = y.astype(o_ref.dtype)


def _conv1x1_banded_interp_kernel(x_ref, w_ref, b_ref, g_ref, o_ref, *, tn):
    # x: (TN, 1, Cin, band)  w: (Cout, Cin)  b: (Cout, 1) f32
    # g: (1, band, TLout)    o: (TN, Cout, TLout)
    w = w_ref[...]
    b = b_ref[...]
    g = g_ref[0]
    for bi in range(tn):
        y = jnp.dot(w, x_ref[bi, 0], preferred_element_type=jnp.float32) + b
        o_ref[bi] = jnp.dot(y.astype(g.dtype), g,
                            preferred_element_type=jnp.float32).astype(o_ref.dtype)


def _fused_transpose_kernel(x_ref, w2_ref, b2_ref, r_ref, m_ref, o_ref, *, s, cout, tn):
    # x:  (TN, Cin, TL)     w2: (s*Cout, Cin)    b2: (s*Cout, 1) f32
    # r:  (TL, s*TL) 0/1    m:  (s, s*TL) f32 0/1 phase masks
    # o:  (TN, Cout, s*TL)
    r = r_ref[...]
    w2 = w2_ref[...]
    for bi in range(tn):
        # nearest-upsample along lanes: xu[:, j] = x[:, j // s]; exact in x.dtype.
        xu = jnp.dot(x_ref[bi], r, preferred_element_type=r.dtype)        # (Cin, s*TL)
        acc = None
        for p in range(s):                        # static unroll, s is small
            zp = jnp.dot(w2[p * cout:(p + 1) * cout, :], xu,
                         preferred_element_type=jnp.float32)              # (Cout, s*TL)
            term = m_ref[p:p + 1, :] * (zp + b2_ref[p * cout:(p + 1) * cout, :])
            acc = term if acc is None else acc + term
        o_ref[bi] = acc.astype(o_ref.dtype)


# --------------------------------------------------------------------------
# Module
# --------------------------------------------------------------------------
class FlexibleExitAdapter1D:
    """JAX/Pallas port of the PyTorch module. Parameters init'd deterministically."""

    def __init__(self, in_channels, out_channels, upsample_type='interpolate',
                 scale_factor=1, mode='linear', key=None):
        if key is None:
            key = jax.random.PRNGKey(0)
        self.in_channels = in_channels
        self.out_channels = out_channels
        self.upsample_type = upsample_type
        self.scale_factor = scale_factor
        self.mode = mode
        self._interp_cache = {}
        self._transpose_cache = {}

        k1, k2, k3, k4 = jax.random.split(key, 4)
        # Conv1d(in, out, k=1): weight (Cout, Cin), bias (Cout,)
        bound = 1.0 / math.sqrt(in_channels)
        self.w = jax.random.uniform(k1, (out_channels, in_channels),
                                    minval=-bound, maxval=bound, dtype=jnp.float32)
        self.b = jax.random.uniform(k2, (out_channels,),
                                    minval=-bound, maxval=bound, dtype=jnp.float32)

        if self.upsample_type == 'transpose':
            if not isinstance(self.scale_factor, int):
                raise ValueError("For 'transpose', scale_factor must be integer.")
            if self.scale_factor < 1:
                raise ValueError('scale_factor must be >= 1.')
            s = self.scale_factor
            # ConvTranspose1d(out, out, k=s, stride=s): weight (Cin_t, Cout_t, s)
            bound_t = 1.0 / math.sqrt(out_channels * s)
            self.wt = jax.random.uniform(k3, (out_channels, out_channels, s),
                                         minval=-bound_t, maxval=bound_t,
                                         dtype=jnp.float32)
            self.bt = jax.random.uniform(k4, (out_channels,),
                                         minval=-bound_t, maxval=bound_t,
                                         dtype=jnp.float32)
            # Offline fold: ConvT(Conv(x))[n,o,l*s+p] = sum_i W2[p,o,i] x[n,i,l] + b2[p,o]
            w2 = jnp.einsum('cop,ci->poi', self.wt, self.w)                   # (s, Cout, Cin)
            b2 = jnp.einsum('cop,c->po', self.wt, self.b) + self.bt[None, :]  # (s, Cout)
            self.w2r = w2.reshape(s * out_channels, in_channels)
            self.b2r = b2.reshape(s * out_channels, 1).astype(jnp.float32)
        else:
            self.wt = None
            self.bt = None
            self.w2r = None
            self.b2r = None

    # ---------------- cached constant tables ----------------
    def _interp_tables(self, L, dtype):
        key = (int(L), np.dtype(dtype).name)
        hit = self._interp_cache.get(key)
        if hit is not None:
            return hit
        s = int(self.scale_factor)
        TLout = _pick_lane_tile(L * s, _INTERP_LANE_TARGET)
        starts, band, G = _banded_interp_tables(L, s, TLout)
        idx = (starts[:, None] + np.arange(band)[None, :]).reshape(-1)
        entry = (TLout, band, G.shape[0],
                 jnp.asarray(idx, dtype=jnp.int32),
                 jnp.asarray(G, dtype=dtype))
        self._interp_cache[key] = entry
        return entry

    def _transpose_tables(self, TL, dtype):
        key = (int(TL), np.dtype(dtype).name)
        hit = self._transpose_cache.get(key)
        if hit is not None:
            return hit
        s = int(self.scale_factor)
        entry = (jnp.asarray(_nearest_upsample_matrix(TL, s), dtype=dtype),
                 jnp.asarray(_phase_masks(TL * s, s), dtype=jnp.float32))
        self._transpose_cache[key] = entry
        return entry

    # ---------------- forward ----------------
    def __call__(self, x):
        N, Cin, L = x.shape
        assert Cin == self.in_channels
        Cout = self.out_channels
        s = self.scale_factor

        w = self.w.astype(x.dtype)                # bf16 x -> bf16 MXU operands
        b = self.b.reshape(Cout, 1).astype(jnp.float32)
        cparams = _compiler_params()

        # ------- conv-only (no upsample / scale_factor == 1, as in PyTorch) -------
        if self.upsample_type == 'none' or s == 1:
            TN = _pick_batch_tile(N)
            TL = _pick_lane_tile(L, _CONV_LANE_TARGET)
            return pl.pallas_call(
                functools.partial(_conv1x1_kernel, tn=TN),
                out_shape=jax.ShapeDtypeStruct((N, Cout, L), x.dtype),
                grid=(pl.cdiv(N, TN), pl.cdiv(L, TL)),
                in_specs=[
                    pl.BlockSpec((TN, Cin, TL), lambda nb, l: (nb, 0, l)),
                    _const_block_spec((Cout, Cin), lambda nb, l: (0, 0)),
                    _const_block_spec((Cout, 1), lambda nb, l: (0, 0)),
                ],
                out_specs=pl.BlockSpec((TN, Cout, TL), lambda nb, l: (nb, 0, l)),
                compiler_params=cparams,
            )(x, w, b)

        # ------- interpolate (linear, align_corners=False) -------
        if self.upsample_type == 'interpolate':
            if self.mode != 'linear':
                # TODO(synk): only mode='linear' (align_corners=False) is implemented.
                raise NotImplementedError(f"interpolate mode={self.mode} not implemented")
            if int(s) != s or s < 1:
                # TODO(synk): non-integer scale factors (allowed by F.interpolate) unsupported.
                raise ValueError('integer scale_factor >= 1 required')
            s = int(s)
            L_out = L * s
            TLout, band, J, idx, G = self._interp_tables(L, x.dtype)
            TN = _pick_batch_tile(N, 4)
            # Pre-gather the per-tile source bands (layout plumbing, O(|x|) bytes):
            # xb[n, j, :, r] = x[n, :, starts[j] + r]
            xb = jnp.take(x, idx, axis=2).reshape(N, Cin, J, band)
            xb = jnp.transpose(xb, (0, 2, 1, 3))
            return pl.pallas_call(
                functools.partial(_conv1x1_banded_interp_kernel, tn=TN),
                out_shape=jax.ShapeDtypeStruct((N, Cout, L_out), x.dtype),
                grid=(pl.cdiv(N, TN), J),
                in_specs=[
                    pl.BlockSpec((TN, 1, Cin, band), lambda nb, j: (nb, j, 0, 0)),
                    _const_block_spec((Cout, Cin), lambda nb, j: (0, 0)),
                    _const_block_spec((Cout, 1), lambda nb, j: (0, 0)),
                    pl.BlockSpec((1, band, TLout), lambda nb, j: (j, 0, 0)),
                ],
                out_specs=pl.BlockSpec((TN, Cout, TLout), lambda nb, j: (nb, 0, j)),
                compiler_params=cparams,
            )(xb, w, b, G)

        # ------- learned transpose upsample -------
        if self.upsample_type == 'transpose':
            TN = _pick_batch_tile(N, 4)
            itemsize = np.dtype(x.dtype).itemsize
            tl_target = int(math.sqrt(_R_BYTES_BUDGET / (s * itemsize)))
            TL = _pick_lane_tile(L, max(tl_target, 128))
            TLo = TL * s
            R, M = self._transpose_tables(TL, x.dtype)
            w2 = self.w2r.astype(x.dtype)
            b2 = self.b2r
            kern = functools.partial(_fused_transpose_kernel, s=s, cout=Cout, tn=TN)
            return pl.pallas_call(
                kern,
                out_shape=jax.ShapeDtypeStruct((N, Cout, L * s), x.dtype),
                grid=(pl.cdiv(N, TN), pl.cdiv(L, TL)),
                in_specs=[
                    pl.BlockSpec((TN, Cin, TL), lambda nb, l: (nb, 0, l)),
                    _const_block_spec((s * Cout, Cin), lambda nb, l: (0, 0)),
                    _const_block_spec((s * Cout, 1), lambda nb, l: (0, 0)),
                    _const_block_spec((TL, TLo), lambda nb, l: (0, 0)),
                    _const_block_spec((s, TLo), lambda nb, l: (0, 0)),
                ],
                out_specs=pl.BlockSpec((TN, Cout, TLo), lambda nb, l: (nb, 0, l)),
                compiler_params=cparams,
            )(x, w2, b2, R, M)

        raise ValueError(f'Unknown upsample_type={self.upsample_type}')


# --------------------------------------------------------------------------
# Main
# --------------------------------------------------------------------------
if __name__ == "__main__":
    key = jax.random.PRNGKey(0)
    kx, kp, kt, kr = jax.random.split(key, 4)

    N, Cin, Cout, L, s = 2, 4, 8, 16, 2
    x = jax.random.normal(kx, (N, Cin, L), dtype=jnp.float32)

    # --- interpolate path (mode='linear', align_corners=False) ---
    mod = FlexibleExitAdapter1D(Cin, Cout, upsample_type='interpolate',
                                scale_factor=s, mode='linear', key=kp)
    out = jax.block_until_ready(mod(x))
    assert out.shape == (N, Cout, L * s), out.shape

    y_ref = jnp.einsum('oi,nil->nol', mod.w, x) + mod.b[None, :, None]
    G_ref = jnp.asarray(_linear_interp_matrix(L, s))
    ref = jnp.einsum('nol,lm->nom', y_ref, G_ref)
    assert jnp.allclose(out, ref, atol=2e-4, rtol=2e-4)

    # second call hits the cached banded interpolation tables
    out2 = jax.block_until_ready(mod(x))
    assert jnp.allclose(out2, ref, atol=2e-4, rtol=2e-4)

    # bf16 fast path (bf16 MXU operands, f32 accumulation)
    out_bf = jax.block_until_ready(mod(x.astype(jnp.bfloat16)))
    assert out_bf.shape == (N, Cout, L * s)
    assert jnp.allclose(out_bf.astype(jnp.float32), ref, atol=1e-1, rtol=1e-1)

    # --- interpolate with a length whose output does not divide the lane tile ---
    L2 = 600
    x2 = jax.random.normal(kr, (N, Cin, L2), dtype=jnp.float32)
    out_r = jax.block_until_ready(mod(x2))
    assert out_r.shape == (N, Cout, L2 * s)
    y2 = jnp.einsum('oi,nil->nol', mod.w, x2) + mod.b[None, :, None]
    ref_r = jnp.einsum('nol,lm->nom', y2, jnp.asarray(_linear_interp_matrix(L2, s)))
    assert jnp.allclose(out_r, ref_r, atol=1e-3, rtol=1e-3)

    # --- scale_factor == 1 path (conv only, matches the PyTorch short-circuit) ---
    mod_id = FlexibleExitAdapter1D(Cin, Cout, upsample_type='interpolate',
                                   scale_factor=1, key=kp)
    out_id = jax.block_until_ready(mod_id(x))
    assert out_id.shape == (N, Cout, L)
    assert jnp.allclose(out_id, y_ref, atol=2e-4, rtol=2e-4)

    # conv-only with a ragged lane grid (L not a multiple of the 2048-lane tile)
    L3 = 2176
    x3 = jax.random.normal(kr, (1, Cin, L3), dtype=jnp.float32)
    out_c = jax.block_until_ready(mod_id(x3))
    ref_c = jnp.einsum('oi,nil->nol', mod_id.w, x3) + mod_id.b[None, :, None]
    assert out_c.shape == (1, Cout, L3)
    assert jnp.allclose(out_c, ref_c, atol=1e-3, rtol=1e-3)

    # --- transpose path (ConvTranspose1d, kernel=stride=s) ---
    mod_t = FlexibleExitAdapter1D(Cin, Cout, upsample_type='transpose',
                                  scale_factor=s, key=kt)
    out_t = jax.block_until_ready(mod_t(x))
    assert out_t.shape == (N, Cout, L * s)
    y_t = jnp.einsum('oi,nil->nol', mod_t.w, x) + mod_t.b[None, :, None]
    ref_t = (jnp.einsum('ncl,cop->nolp', y_t, mod_t.wt)
             + mod_t.bt[None, :, None, None]).reshape(N, Cout, L * s)
    assert jnp.allclose(out_t, ref_t, atol=2e-4, rtol=2e-4)

    print("KERNEL_OK")
</pallas_src>

<mosaic_0001>
module attributes {stable_mosaic.version = 11 : i64} {
  func.func @_conv1x1_banded_interp_kernel(%arg0: i32, %arg1: i32, %arg2: memref<2x1x4x16xf32, #tpu.memory_space<vmem>>, %arg3: memref<8x4xf32, #tpu.memory_space<vmem>>, %arg4: memref<8x1xf32, #tpu.memory_space<vmem>>, %arg5: memref<1x16x32xf32, #tpu.memory_space<vmem>>, %arg6: memref<2x8x32xf32, #tpu.memory_space<vmem>>) attributes {dimension_semantics = [#tpu.dimension_semantics<parallel>, #tpu.dimension_semantics<parallel>], iteration_bounds = array<i64: 1, 1>, scalar_prefetch = 0 : i64, scratch_operands = 0 : i64, tpu.core_type = #tpu.core_type<tc>, window_params = [{transform_indices = @transform_0, window_bounds = array<i64: 2, 1, 4, 16>}, {pipeline_mode = #tpu.pipeline_mode<synchronous>, transform_indices = @transform_1, window_bounds = array<i64: 8, 4>}, {pipeline_mode = #tpu.pipeline_mode<synchronous>, transform_indices = @transform_2, window_bounds = array<i64: 8, 1>}, {transform_indices = @transform_3, window_bounds = array<i64: 1, 16, 32>}, {transform_indices = @transform_4, window_bounds = array<i64: 2, 8, 32>}]} {
    %c0 = arith.constant 0 : index
    %c0_0 = arith.constant 0 : index
    %0 = vector.load %arg3[%c0, %c0_0] : memref<8x4xf32, #tpu.memory_space<vmem>>, vector<8x4xf32>
    %c0_1 = arith.constant 0 : index
    %c0_2 = arith.constant 0 : index
    %1 = vector.load %arg4[%c0_1, %c0_2] : memref<8x1xf32, #tpu.memory_space<vmem>>, vector<8x1xf32>
    %c0_3 = arith.constant 0 : index
    %c0_4 = arith.constant 0 : index
    %c0_5 = arith.constant 0 : index
    %2 = vector.load %arg5[%c0_3, %c0_4, %c0_5] : memref<1x16x32xf32, #tpu.memory_space<vmem>>, vector<1x16x32xf32>
    %3 = vector.shape_cast %2 : vector<1x16x32xf32> to vector<16x32xf32>
    %c0_6 = arith.constant 0 : index
    %c0_7 = arith.constant 0 : index
    %c0_8 = arith.constant 0 : index
    %c0_9 = arith.constant 0 : index
    %4 = vector.load %arg2[%c0_6, %c0_7, %c0_8, %c0_9] : memref<2x1x4x16xf32, #tpu.memory_space<vmem>>, vector<1x1x4x16xf32>
    %5 = vector.shape_cast %4 : vector<1x1x4x16xf32> to vector<4x16xf32>
    %cst = arith.constant dense<0.000000e+00> : vector<8x16xf32>
    %6 = tpu.matmul %0, %5, %cst {dimension_numbers = #tpu.dot_dimension_numbers<[1], [0], [0], [1], [0, 0, 1, 1], [], []>} : vector<8x4xf32>, vector<4x16xf32>, vector<8x16xf32> -> vector<8x16xf32>
    %7 = vector.broadcast %1 : vector<8x1xf32> to vector<8x16xf32>
    %8 = arith.addf %6, %7 : vector<8x16xf32>
    %cst_10 = arith.constant dense<0.000000e+00> : vector<8x32xf32>
    %9 = tpu.matmul %8, %3, %cst_10 {dimension_numbers = #tpu.dot_dimension_numbers<[1], [0], [0], [1], [0, 0, 1, 1], [], []>} : vector<8x16xf32>, vector<16x32xf32>, vector<8x32xf32> -> vector<8x32xf32>
    %c0_11 = arith.constant 0 : index
    %c0_12 = arith.constant 0 : index
    %c0_13 = arith.constant 0 : index
    %10 = vector.load %arg6[%c0_11, %c0_12, %c0_13] : memref<2x8x32xf32, #tpu.memory_space<vmem>>, vector<1x8x32xf32>
    %11 = vector.shape_cast %10 : vector<1x8x32xf32> to vector<8x32xf32>
    %12 = vector.shape_cast %9 : vector<8x32xf32> to vector<1x8x32xf32>
    tpu.vector_store %arg6[%c0_11, %c0_12, %c0_13], %12 {strides = array<i32>} : memref<2x8x32xf32, #tpu.memory_space<vmem>>, vector<1x8x32xf32>,
    %c1 = arith.constant 1 : index
    %c0_14 = arith.constant 0 : index
    %c0_15 = arith.constant 0 : index
    %c0_16 = arith.constant 0 : index
    %13 = vector.load %arg2[%c1, %c0_14, %c0_15, %c0_16] : memref<2x1x4x16xf32, #tpu.memory_space<vmem>>, vector<1x1x4x16xf32>
    %14 = vector.shape_cast %13 : vector<1x1x4x16xf32> to vector<4x16xf32>
    %cst_17 = arith.constant dense<0.000000e+00> : vector<8x16xf32>
    %15 = tpu.matmul %0, %14, %cst_17 {dimension_numbers = #tpu.dot_dimension_numbers<[1], [0], [0], [1], [0, 0, 1, 1], [], []>} : vector<8x4xf32>, vector<4x16xf32>, vector<8x16xf32> -> vector<8x16xf32>
    %16 = vector.broadcast %1 : vector<8x1xf32> to vector<8x16xf32>
    %17 = arith.addf %15, %16 : vector<8x16xf32>
    %cst_18 = arith.constant dense<0.000000e+00> : vector<8x32xf32>
    %18 = tpu.matmul %17, %3, %cst_18 {dimension_numbers = #tpu.dot_dimension_numbers<[1], [0], [0], [1], [0, 0, 1, 1], [], []>} : vector<8x16xf32>, vector<16x32xf32>, vector<8x32xf32> -> vector<8x32xf32>
    %c1_19 = arith.constant 1 : index
    %c0_20 = arith.constant 0 : index
    %c0_21 = arith.constant 0 : index
    %19 = vector.load %arg6[%c1_19, %c0_20, %c0_21] : memref<2x8x32xf32, #tpu.memory_space<vmem>>, vector<1x8x32xf32>
    %20 = vector.shape_cast %19 : vector<1x8x32xf32> to vector<8x32xf32>
    %21 = vector.shape_cast %18 : vector<8x32xf32> to vector<1x8x32xf32>
    tpu.vector_store %arg6[%c1_19, %c0_20, %c0_21], %21 {strides = array<i32>} : memref<2x8x32xf32, #tpu.memory_space<vmem>>, vector<1x8x32xf32>,
    return
  }
  func.func @transform_0(%arg0: i32, %arg1: i32) -> (i32, i32, i32, i32) {
    %c0_i32 = arith.constant 0 : i32
    %c0_i32_0 = arith.constant 0 : i32
    %c0_i32_1 = arith.constant 0 : i32
    return %arg0, %arg1, %c0_i32, %c0_i32_0 : i32, i32, i32, i32
  }
  func.func @transform_1(%arg0: i32, %arg1: i32) -> (i32, i32) {
    %c0_i32 = arith.constant 0 : i32
    %c0_i32_0 = arith.constant 0 : i32
    %c0_i32_1 = arith.constant 0 : i32
    return %c0_i32, %c0_i32_0 : i32, i32
  }
  func.func @transform_2(%arg0: i32, %arg1: i32) -> (i32, i32) {
    %c0_i32 = arith.constant 0 : i32
    %c0_i32_0 = arith.constant 0 : i32
    %c0_i32_1 = arith.constant 0 : i32
    return %c0_i32, %c0_i32_0 : i32, i32
  }
  func.func @transform_3(%arg0: i32, %arg1: i32) -> (i32, i32, i32) {
    %c0_i32 = arith.constant 0 : i32
    %c0_i32_0 = arith.constant 0 : i32
    %c0_i32_1 = arith.constant 0 : i32
    return %arg1, %c0_i32, %c0_i32_0 : i32, i32, i32
  }
  func.func @transform_4(%arg0: i32, %arg1: i32) -> (i32, i32, i32) {
    %c0_i32 = arith.constant 0 : i32
    %c0_i32_0 = arith.constant 0 : i32
    return %arg0, %c0_i32, %arg1 : i32, i32, i32
  }
}

</mosaic_0001>

<bundles_post_ra>
// kernel: tpu_custom_call.1
= control target key start
LH: loop header
LB: loop body
LE: loop exit
PB: predicated region body
PF: predicated region fallthrough
CT: control target
= control target key end

     0   :  { %9 = vsyncpa [#allocation3], 0  ;;  %s283_s0 = inlined_call_operand.hbm [shape: f32[2,1,4,16], index: 0, kind: input, shape index: {}]   ;;  %s284_s1 = inlined_call_operand.vmem [shape: f32[8,4], index: 1, kind: input, shape index: {}]   ;;  %s285_s2 = inlined_call_operand.vmem [shape: f32[8,1], index: 2, kind: input, shape index: {}]   ;;  %s286_s3 = inlined_call_operand.vmem [shape: f32[1,16,32], index: 3, kind: input, shape index: {}]   ;;  %s287_s4 = inlined_call_operand.hbm [shape: f32[2,8,32], index: 4, kind: output, shape index: {}]  }
   0x1   :  { %10 = vsyncpa [#allocation4], 0  ;;  %s15_s17 = sshll.u32 %s283_s0, 4  ;;  %s233_s18 = smov [#allocation2]   ;;  %s16_s17 = int_to_ptr.hbm [resolvable:$true] %s15_s17 }
   0x2   :  { %s17_s19 = sshll.u32 %s233_s18, 4  ;;  %s234_s20 = smov 64   ;;  %s18_s19 = int_to_ptr.vmem [resolvable:$true] %s17_s19 }
   0x3   :  { %s235_s21 = smov 4  }
   0x4   :  { %23 = dma.hbm_to_vmem [thread:$0]  %s16_s17, 128, %s18_s19, [#allocation3], %s234_s20, %s234_s20, %s235_s21  }
   0x5   :  { %229 = dma.done.wait [#allocation3], 128  }
   0x6   :  { %230 = vsyncadd [#allocation3], 4294967168  ;;  %v236_v0 = vmov 0   ;;  %vm48_vm0 = vcmask 1043456   ;;  %vm44_vm1 = vcmask 31744   ;;  %v34_v2 = vld [vmem:[%s284_s1] sm:$0xff] }
   0x7   :  { %180 = vset.pattern.permute.xlu0 %v236_v0  ;;  %v99_v1 = vld [vmem:[#allocation2 + $0x4] sm:$0xf]  ;;  %v38_v3 = vld [vmem:[#allocation2] sm:$0xf]  ;;  %v37_v5 = vld [vmem:[%s286_s3 + $0x8] sm:$0xff]  ;;  %vm72_vm2 = vcmask 130048  }
   0x8   :  { %170 = vmatpush.msk.msra.mxu2 %vm48_vm0, %v99_v1  ;;  %167 = vmatpush.msk.msra.mxu0 %vm48_vm0, %v38_v3  ;;  %v35_v4 = vld [vmem:[%s285_s2] sm:$0xff]  ;;  %vm96_vm3 = vcmask 261120   ;;  %s237_s1 = smov [#allocation5]   ;;  %s154_s5 = sshll.u32 %s287_s4, 4  ;;  %s155_s5 = int_to_ptr.hbm [resolvable:$true] %s154_s5 }
   0x9   :  { %171 = vmatmul.msk.f32.vlgmr.msra.gmra.mxu2 %vm44_vm1, %v34_v2  ;;  %168 = vmatmul.msk.f32.vlgmr.msra.gmra.mxu0 %vm44_vm1, %v34_v2  ;;  %v36_v6 = vld [vmem:[%s286_s3] sm:$0xff]  ;;  %s152_s2 = sshll.u32 %s237_s1, 4  ;;  %s238_s3 = smov 128   ;;  %s153_s2 = int_to_ptr.vmem [resolvable:$true] %s152_s2 }
   0xa   :  { %41 = vperm.xlu0 %180, %v35_v4   ;;  %90 = vmatpush.msra.mxu1 %v37_v5  ;;  %s239_s6 = smov 8  }
   0xb   :  { %140 = vmatpush.msra.mxu3 %v37_v5 }
   0xc   :  { %91 = vmatpush.msra.mxu1 %v36_v6 }
   0xd   :  { %141 = vmatpush.msra.mxu3 %v36_v6 }
  0x7c   :  { %v42_v7 = vpop.permute.xlu0 %41 }
  0x86   :  { %v69_v8 = vpop.f32.mrf.mxu0 }
  0x87   :  { %v70_v9 = vadd.f32 %v69_v8, %v42_v7 }
  0x89   :  { %169 = vmatmul.msk.f32.vlgmr.msra.gmra.mxu1 %vm72_vm2, %v70_v9 }
  0x8c   :  { %v120_v10 = vpop.f32.mrf.mxu2 }
  0x8d   :  { %v121_v11 = vadd.f32 %v120_v10, %v42_v7 }
  0x8f   :  { %172 = vmatmul.msk.f32.vlgmr.msra.gmra.mxu3 %vm72_vm2, %v121_v11 }
 0x106   :  { %v93_v12 = vpop.f32.mrf.mxu1 }
 0x107   :  { %97 = vst.msk [vmem:[#allocation5] sm:$0xff] %vm96_vm3, %v93_v12 }
 0x112   :  { %v143_v13 = vpop.f32.mrf.mxu3 }
 0x113   :  { %147 = vst.msk [vmem:[#allocation5 + $0x8] sm:$0xff] %vm96_vm3, %v143_v13 }
 0x114   :  { %160 = dma.vmem_to_hbm [thread:$0]  %s153_s2, 256, %s155_s5, [#allocation4], %s238_s3, %s238_s3, %s239_s6  }
 0x115   :  { %231 = dma.done.wait [#allocation4], 256  }
 0x116   :  { %232 = vsyncadd [#allocation4], 4294967040 }
 0x117   :  { %165 = vsyncpa [#allocation3], 1 }
 0x118   :  { %166 = vsyncpa [#allocation4], 1 }

</bundles_post_ra>
